<compile_context>
chip_gen: v5e
topology: v5e:2x2
jax: 0.10.0
libtpu: 0.0.40
codegen_flags: <defaults>
</compile_context>

<pallas_src>
import math
import jax
import jax.numpy as jnp
from jax.experimental import pallas as pl
from jax.experimental.pallas import tpu as pltpu

SCALE = 64.0
MARGIN = 0.5
COS_M = math.cos(MARGIN)
SIN_M = math.sin(MARGIN)


def arcface_kernel(x_ref, lab_ref, o_ref):
    # x_ref: (tb, tc) tile of iplogits, lab_ref: (tb, 1) int32 labels tile.
    x = x_ref[...].astype(jnp.float32)
    lab = lab_ref[...]                                   # (tb, 1)
    tb, tc = x.shape

    # Global class index of each lane in this tile (column grid axis = 1).
    col0 = pl.program_id(1) * tc
    col = col0 + jax.lax.broadcasted_iota(jnp.int32, (tb, tc), 1)
    is_target = (col == lab) & (lab != -1)               # broadcast (tb,1)->(tb,tc)

    y = 1.0 - x                                          # cos(theta)
    # cos(theta + m) = cos(theta)*cos(m) - sin(theta)*sin(m)
    sin_theta = jnp.sqrt(jnp.maximum(1.0 - y * y, 0.0))
    y_margin = y * COS_M - sin_theta * SIN_M

    o_ref[...] = ((-SCALE) * jnp.where(is_target, y_margin, y)).astype(o_ref.dtype)


def _round_up(x: int, m: int) -> int:
    return (x + m - 1) // m * m


def _sublane_unit(dtype) -> int:
    # Packed-tile sublane minimum: f32 -> 8, bf16/f16 -> 16, int8/fp8 -> 32.
    return max(8, 32 // jnp.dtype(dtype).itemsize)


def _vmem_capacity_bytes() -> int:
    try:
        cap = getattr(pltpu.get_tpu_info(), "vmem_capacity_bytes", None)
        if cap:
            return int(cap)
    except Exception:
        pass
    return 64 << 20  # conservative fallback: v7x per-TensorCore VMEM


def arcface(
    iplogits: jax.Array,
    labels: jax.Array,
    *,
    max_block_rows: int = 512,
    max_block_cols: int = 8192,
    donate_input: bool = False,
) -> jax.Array:
    B, C = iplogits.shape
    lab2d = labels.reshape(B, 1).astype(jnp.int32)

    itemsize = jnp.dtype(iplogits.dtype).itemsize
    unit = _sublane_unit(iplogits.dtype)

    vmem_cap = _vmem_capacity_bytes()
    # <= 8 MiB tiles on 64 MiB parts (v7x), <= 16 MiB on 128 MiB parts (v5e/v6e).
    tile_budget = min(16 << 20, vmem_cap // 8)

    # Lane-dense column tile; never collapses below 128 even for awkward C.
    tc = max(128, min(_round_up(C, 128), max_block_cols))

    # Row tile from the VMEM budget, dtype-aware sublane rounding.
    tb = max(unit, (tile_budget // (tc * itemsize)) // unit * unit)
    tb = min(tb, max_block_rows, _round_up(B, unit))
    tb = max(unit, tb // unit * unit)

    # Guarantee >= 2 grid blocks (prefer the row axis) so the
    # ("parallel","parallel") grid shards across both TensorCores on v7x.
    if pl.cdiv(B, tb) * pl.cdiv(C, tc) < 2:
        if B > unit:
            tb = max(unit, _round_up(-(-B // 2), unit))
        elif _round_up(C, 128) > 128:
            tc = max(128, _round_up(-(-_round_up(C, 128) // 2), 128))

    grid = (pl.cdiv(B, tb), pl.cdiv(C, tc))

    tile_bytes = tb * tc * itemsize
    # in + out, double-buffered, plus labels + headroom; stay under physical VMEM.
    vmem_limit = max(32 << 20, 4 * tile_bytes + (4 << 20))
    vmem_limit = int(min(vmem_limit, max(32 << 20, vmem_cap - (16 << 20))))

    cost = pl.CostEstimate(
        flops=12 * B * C,
        transcendentals=B * C,
        bytes_accessed=2 * B * C * itemsize + B * 4,
    )

    call_kwargs = {}
    if donate_input:
        # Only profitable if the caller actually donates iplogits at the
        # jax.jit level; otherwise XLA inserts a defensive copy (extra HBM pass).
        call_kwargs["input_output_aliases"] = {0: 0}

    return pl.pallas_call(
        arcface_kernel,
        out_shape=jax.ShapeDtypeStruct((B, C), iplogits.dtype),
        grid=grid,
        in_specs=[
            pl.BlockSpec((tb, tc), lambda i, j: (i, j)),
            pl.BlockSpec((tb, 1), lambda i, j: (i, 0)),
        ],
        out_specs=pl.BlockSpec((tb, tc), lambda i, j: (i, j)),
        compiler_params=pltpu.CompilerParams(
            dimension_semantics=("parallel", "parallel"),
            vmem_limit_bytes=vmem_limit,
        ),
        cost_estimate=cost,
        **call_kwargs,
    )(iplogits, lab2d)


def arcface_ref(iplogits, labels):
    """Pure-JAX reference matching the PyTorch forward (arccos/cos form)."""
    B, C = iplogits.shape
    theta = jnp.arccos(1.0 - iplogits.astype(jnp.float32))
    col = jnp.arange(C, dtype=jnp.int32)[None, :]
    lab = labels.reshape(B, 1).astype(jnp.int32)
    is_target = (col == lab) & (lab != -1)
    theta = jnp.where(is_target, theta + MARGIN, theta)
    return (-SCALE * jnp.cos(theta)).astype(iplogits.dtype)


if __name__ == "__main__":
    # Small, deliberately unaligned shapes: partial row blocks and a column
    # edge block (200 < 256) exercise the cdiv-grid masking path.
    B, C = 12, 200
    key = jax.random.PRNGKey(0)
    k_x, k_lab = jax.random.split(key)

    # iplogits in [0, 2) so 1 - iplogits lies in arccos' domain (-1, 1].
    iplogits = jax.random.uniform(
        k_x, (B, C), dtype=jnp.float32, minval=0.0, maxval=2.0
    )
    labels = jax.random.randint(k_lab, (B,), 0, C, dtype=jnp.int32)
    labels = labels.at[0].set(-1)  # one "ignore" row, exercises the mask

    ref = arcface_ref(iplogits, labels)

    # Default configuration (cdiv grid, partial edge blocks, >=2 row blocks).
    out = jax.block_until_ready(arcface(iplogits, labels))
    assert out.shape == (B, C) and out.dtype == jnp.float32
    assert jnp.allclose(out, ref, rtol=1e-3, atol=1e-2), "mismatch vs reference"

    # Small-block configuration: forces a 2x2 grid, checks column-offset logic.
    out2 = jax.block_until_ready(
        arcface(iplogits, labels, max_block_rows=8, max_block_cols=128)
    )
    assert jnp.allclose(out2, ref, rtol=1e-3, atol=1e-2), "mismatch (tiled) vs reference"

    # bf16 path: sublane unit 16, packed tiles, f32 math inside the kernel.
    ip_bf16 = iplogits.astype(jnp.bfloat16)
    out3 = jax.block_until_ready(arcface(ip_bf16, labels))
    ref3 = arcface_ref(ip_bf16, labels)
    assert out3.shape == (B, C) and out3.dtype == jnp.bfloat16
    assert jnp.allclose(
        out3.astype(jnp.float32), ref3.astype(jnp.float32), rtol=2e-2, atol=0.75
    ), "mismatch (bf16) vs reference"

    print("KERNEL_OK")
</pallas_src>

<mosaic_0001>
module attributes {stable_mosaic.version = 11 : i64} {
  func.func @arcface_kernel(%arg0: i32, %arg1: i32, %arg2: memref<8x256xf32, #tpu.memory_space<vmem>>, %arg3: memref<8x1xi32, #tpu.memory_space<vmem>>, %arg4: memref<8x256xf32, #tpu.memory_space<vmem>>) attributes {dimension_semantics = [#tpu.dimension_semantics<parallel>, #tpu.dimension_semantics<parallel>], iteration_bounds = array<i64: 2, 1>, scalar_prefetch = 0 : i64, scratch_operands = 0 : i64, tpu.core_type = #tpu.core_type<tc>, window_params = [{transform_indices = @transform_0, window_bounds = array<i64: 8, 256>}, {transform_indices = @transform_1, window_bounds = array<i64: 8, 1>}, {transform_indices = @transform_2, window_bounds = array<i64: 8, 256>}]} {
    %c0 = arith.constant 0 : index
    %c0_0 = arith.constant 0 : index
    %0 = vector.load %arg2[%c0, %c0_0] : memref<8x256xf32, #tpu.memory_space<vmem>>, vector<8x256xf32>
    %c0_1 = arith.constant 0 : index
    %c0_2 = arith.constant 0 : index
    %1 = vector.load %arg3[%c0_1, %c0_2] : memref<8x1xi32, #tpu.memory_space<vmem>>, vector<8x1xi32>
    %c256_i32 = arith.constant 256 : i32
    %2 = arith.muli %arg1, %c256_i32 : i32
    %3 = tpu.iota {dimensions = array<i32: 1>} : vector<8x256xi32>
    %4 = vector.broadcast %2 : i32 to vector<8x256xi32>
    %5 = arith.addi %4, %3 : vector<8x256xi32>
    %6 = vector.broadcast %1 : vector<8x1xi32> to vector<8x256xi32>
    %7 = arith.cmpi eq, %5, %6 : vector<8x256xi32>
    %c-1_i32 = arith.constant -1 : i32
    %8 = vector.broadcast %c-1_i32 : i32 to vector<8x1xi32>
    %9 = arith.cmpi ne, %1, %8 : vector<8x1xi32>
    %10 = vector.broadcast %9 : vector<8x1xi1> to vector<8x256xi1>
    %11 = arith.andi %7, %10 : vector<8x256xi1>
    %cst = arith.constant 1.000000e+00 : f32
    %12 = vector.broadcast %cst : f32 to vector<8x256xf32>
    %13 = arith.subf %12, %0 : vector<8x256xf32>
    %14 = arith.mulf %13, %13 : vector<8x256xf32>
    %cst_3 = arith.constant 1.000000e+00 : f32
    %15 = vector.broadcast %cst_3 : f32 to vector<8x256xf32>
    %16 = arith.subf %15, %14 : vector<8x256xf32>
    %cst_4 = arith.constant 0.000000e+00 : f32
    %17 = vector.broadcast %cst_4 : f32 to vector<8x256xf32>
    %18 = arith.maximumf %16, %17 : vector<8x256xf32>
    %19 = math.sqrt %18 : vector<8x256xf32>
    %cst_5 = arith.constant 0.87758255 : f32
    %20 = vector.broadcast %cst_5 : f32 to vector<8x256xf32>
    %21 = arith.mulf %13, %20 : vector<8x256xf32>
    %cst_6 = arith.constant 0.47942555 : f32
    %22 = vector.broadcast %cst_6 : f32 to vector<8x256xf32>
    %23 = arith.mulf %19, %22 : vector<8x256xf32>
    %24 = arith.subf %21, %23 : vector<8x256xf32>
    %25 = arith.select %11, %24, %13 : vector<8x256xi1>, vector<8x256xf32>
    %cst_7 = arith.constant -6.400000e+01 : f32
    %26 = vector.broadcast %cst_7 : f32 to vector<8x256xf32>
    %27 = arith.mulf %26, %25 : vector<8x256xf32>
    %c0_8 = arith.constant 0 : index
    %c0_9 = arith.constant 0 : index
    %28 = vector.load %arg4[%c0_8, %c0_9] : memref<8x256xf32, #tpu.memory_space<vmem>>, vector<8x256xf32>
    tpu.vector_store %arg4[%c0_8, %c0_9], %27 {strides = array<i32>} : memref<8x256xf32, #tpu.memory_space<vmem>>, vector<8x256xf32>,
    return
  }
  func.func @transform_0(%arg0: i32, %arg1: i32) -> (i32, i32) {
    %c0_i32 = arith.constant 0 : i32
    return %arg0, %arg1 : i32, i32
  }
  func.func @transform_1(%arg0: i32, %arg1: i32) -> (i32, i32) {
    %c0_i32 = arith.constant 0 : i32
    %c0_i32_0 = arith.constant 0 : i32
    return %arg0, %c0_i32 : i32, i32
  }
  func.func @transform_2(%arg0: i32, %arg1: i32) -> (i32, i32) {
    %c0_i32 = arith.constant 0 : i32
    return %arg0, %arg1 : i32, i32
  }
}

</mosaic_0001>

<bundles_post_ra>
// kernel: tpu_custom_call.1
= control target key start
LH: loop header
LB: loop body
LE: loop exit
PB: predicated region body
PF: predicated region fallthrough
CT: control target
= control target key end

     0   :  { %7 = vsyncpa [#allocation3], 0  ;;  %s726_s0 = inlined_call_operand.hbm [shape: f32[12,200], index: 0, kind: input, shape index: {}]   ;;  %s727_s1 = inlined_call_operand.vmem [shape: s32[12,1], index: 1, kind: input, shape index: {}]   ;;  %s728_s2 = inlined_call_operand.hbm [shape: f32[12,200], index: 2, kind: output, shape index: {}]  }
   0x1   :  { %9 = vsyncpa [#allocation3 + $0x1], 0 }
   0x2   :  { %10 = vsyncpa [#allocation4], 0 }
   0x3   :  { %12 = vsyncpa [#allocation4 + $0x1], 0  ;;  %s597_s9 = smov 0   ;;  %s599_s10 = smov 0  }
   0x4   :  { %s601_s11 = smov 0   ;;  %s603_s12 = smov 0  }
   0x5   :  { %s605_s13 = smov 0   ;;  %s607_s14 = smov 0  }
   0x6 LB: > { %s381_s15 = sadd.s32 4294967295, %s579_s14   ;;  %s382_s16 = sadd.s32 4294967294, %s579_s14   ;;  %s579_s14 = sphi %s607_s14, %s18_s14   ;;  %s575_s13 = sphi %s605_s13, %s737_s13   ;;  %s571_s12 = sphi %s603_s12, %s736_s12   ;;  %s567_s11 = sphi %s601_s11, %s735_s11   ;;  %s563_s10 = sphi %s599_s10, %s734_s10   ;;  %s559_s9 = sphi %s597_s9, %s733_s9  }
   0x7   : > { %s30_s17 = sadd.s32 1, %s575_s13  ;;  %s39_s18 = sadd.s32 1, %s567_s11 }
   0x8   : > { %p32_p0 = scmp.ge.s32.totalorder %s30_s17, 2  ;;  %p46_p1 = scmp.ne.s32.totalorder %s567_s11, %s563_s10 }
   0x9   : > { %p47_p2 = scmp.eq.s32.totalorder %s579_s14, 0  ;;  %p52_p3 = scmp.ne.s32.totalorder %s563_s10, %s559_s9 }
   0xa   : > { %s739_s17 = smov (%p32_p0, %s30_s17), 0  ;;  %p53_p5 = scmp.eq.s32.totalorder %s381_s15, 0 }
   0xb   : > { %p638_p4 = por %p47_p2, %p46_p1  ;;  %s34_s20 = ssub.s32 %s575_s13, %s739_s17 }
   0xc   : > { %p104_p6 = scmp.eq.s32.totalorder %s381_s15, 1  ;;  %p37_p7 = scmp.eq.s32.totalorder %s34_s20, 0 }
   0xd   : > { %p644_p8 = por %p53_p5, %p52_p3  ;;  %p110_p10 = scmp.eq.s32.totalorder %s382_s16, 1 }
   0xe   : > { %p648_p9 = por %p104_p6, %p46_p1  ;;  %p384_p12 = scmp.ge.s32.totalorder %s579_s14, 2 }
   0xf   : > { %s653_s23 = scalar_select %p37_p7, %s567_s11, %s39_s18  }
  0x10   : > { %p655_p11 = por %p110_p10, %p52_p3  ;;  %p411_p13 = scmp.lt.s32.totalorder %s579_s14, 2 }
  0x11   : > { %s130_s25 = sand.u32 1, %s567_s11   ;;  %s397_s27 = sshll.u32 %s575_s13, 4 }
  0x12   : > { %s385_s26 = sshll.u32 %s130_s25, 4  ;;  %s141_s30 = scalar_lea.hbm %s726_s0, %s397_s27 }
  0x13   : > { %s134_s3 = scalar_lea.vmem [#allocation2], %s385_s26  ;;  %s143_s5 = sshll.u32 %s141_s30, 4  ;;  %s144_s5 = int_to_ptr.hbm [resolvable:$true] %s143_s5 }
  0x14   : > { %s145_s4 = sshll.u32 %s134_s3, 4  ;;  %p404_p0 = pnand %p411_p13, %p638_p4  ;;  %s146_s4 = int_to_ptr.vmem [resolvable:$true] %s145_s4 }
  0x15   : > { %p388_p1 = scmp.ge.s32.totalorder %s579_s14, 1  ;;  %p157_p2 = scmp.lt.s32.totalorder %s579_s14, 3 }
  0x16   : > { %s131_s6 = scalar_lea.sflag [#allocation3], %s130_s25 }
  0x17   : > { %406 = dma.hbm_to_vmem [thread:$0]  (!%p404_p0), %s144_s5, 256, %s146_s4, %s131_s6  }
  0x18   : > { %p158_p3 = pnand %p388_p1, %p157_p2 }
  0x19   : > { %s671_s7 = sand.u32 (!%p158_p3), 1, %s563_s10  }
  0x1a   : > { %161 = sbr.rel (%p158_p3) target bundleno = 171 (0xab), region = 28  ;;  %s389_s8 = sshll.u32 (!%p158_p3), %s671_s7, 4 }
  0x1b   : > { %s164_s15 = scalar_lea.sflag (!%p158_p3), [#allocation3], %s671_s7  ;;  %s167_s16 = scalar_lea.vmem (!%p158_p3), [#allocation2], %s389_s8 }
  0x1f   : > { %550 = dma.done.wait (%p644_p8), %s164_s15, 256  }
  0x20   : > { %552 = vsyncadd (%p644_p8), %s164_s15, 4294967040  ;;  %p194_p4 = scmp.lt.s32.totalorder %s571_s12, 1  ;;  %v581_v0 = vmov 0   ;;  %v199_v3 = vld [vmem:[%s167_s16] sm:$0xff]  ;;  %v200_v4 = vld [vmem:[%s167_s16 + $0x8] sm:$0xff]  ;;  %v203_v30 = vlaneseq  ;;  %s398_s21 = sshll.u32 %s571_s12, 4 }
  0x21   : > { %462 = vset.pattern.permute.xlu0 %v581_v0  ;;  %v222_v5 = vsub.f32 1.0, %v199_v3  ;;  %v223_v6 = vsub.f32 1.0, %v200_v4  ;;  %s280_s29 = scalar_lea.hbm %s728_s2, %s398_s21  ;;  %s192_s30 = scalar_lea.vmem [#allocation5], %s389_s8 }
  0x22   : > { %s195_s18 = scalar_select %p194_p4, %s571_s12, 1  ;;  %v204_v35 = vand.u32 127, %v203_v30 }
  0x23   : > { %v224_v7 = vmul.f32 %v222_v5, %v222_v5  ;;  %v225_v8 = vmul.f32 %v223_v6, %v223_v6  ;;  %v254_v36 = vmul.f32 0.87758255, %v222_v5  ;;  %v255_v38 = vmul.f32 0.87758255, %v223_v6  ;;  %s282_s3 = sshll.u32 %s192_s30, 4  ;;  %s284_s4 = sshll.u32 %s280_s29, 4  ;;  %s283_s3 = int_to_ptr.vmem [resolvable:$true] %s282_s3  ;;  %s285_s4 = int_to_ptr.hbm [resolvable:$true] %s284_s4 }
  0x24   : > { %s391_s19 = sshll.u32 %s195_s18, 3  ;;  %v205_v40 = vadd.s32 128, %v204_v35  ;;  %s267_s12 = scalar_lea.sflag [#allocation4], %s671_s7 }
  0x25   : > { %s197_s26 = scalar_lea.vmem %s727_s1, %s391_s19  ;;  %v226_v9 = vsub.f32 1.0, %v224_v7  ;;  %v227_v10 = vsub.f32 1.0, %v225_v8  ;;  %s511_s5 = sshra.s32 %s285_s4, 4  ;;  %s512_s5 = int_to_ptr.hbm [resolvable:$true] %s511_s5 }
  0x26   : > { %v201_v1 = vld [vmem:[%s197_s26] sm:$0xff]  ;;  %s513_s6 = scalar_lea.hbm %s512_s5, 16  ;;  %s517_s16 = scalar_lea.hbm %s728_s2, 32 }
  0x27   : > { %210 = vperm.xlu0 %462, %v201_v1   ;;  %vm214_vm0 = vcmp.ne.s32.totalorder %v201_v1, 4294967295  ;;  %v228_v11 = vmax.f32 %v226_v9, 0.0  ;;  %v229_v12 = vmax.f32 %v227_v10, 0.0  ;;  %p514_p5 = scmp.ne.s32.totalorder %s512_s5, %s513_s6  ;;  %p518_p8 = scmp.lt.s32.totalorder %s512_s5, %s728_s2 }
  0x28   : > { %v215_v2 = vsel %vm214_vm0, 1, %v581_v0  ;;  %p519_p10 = scmp.lt.s32.totalorder %s517_s16, %s513_s6 }
  0x29   : > { %463 = vrsqrt.f32 %v228_v11  ;;  %vm237_vm1 = vcmp.eq.f32.partialorder %v228_v11, inf  ;;  %vm249_vm2 = vcmp.eq.f32.partialorder %v229_v12, inf  ;;  %v240_v27 = vand.u32 2147483648, %v228_v11  ;;  %p515_p6 = pnand %p514_p5, %p648_p9 }
  0x2a   : > { %465 = vrsqrt.f32 %v229_v12  ;;  %vm239_vm3 = vcmp.eq.f32.partialorder %v228_v11, 0.0  ;;  %v252_v29 = vand.u32 2147483648, %v229_v12  ;;  %vm251_vm4 = vcmp.eq.f32.partialorder %v229_v12, 0.0  ;;  %p520_p13 = por %p519_p10, %p518_p8 }
  0x2b   : > { %p516_p7 = pneg %p515_p6 }
  0x2d   : > { %p521_p0 = pnand %p520_p13, %p516_p7 }
  0x2f   : > { %217 = vperm.xlu0 %462, %v215_v2   ;;  %v464_v13 = vpop.eup %463 }
  0x30   : > { %v466_v14 = vpop.eup %465  ;;  %v231_v15 = vmul.f32 %v464_v13, %v228_v11 }
  0x31   : > { %v243_v16 = vmul.f32 %v466_v14, %v229_v12 }
  0x32   : > { %v232_v17 = vmul.f32 %v464_v13, %v231_v15 }
  0x33   : > { %v244_v18 = vmul.f32 %v466_v14, %v243_v16 }
  0x34   : > { %v233_v19 = vmul.f32 0.5, %v232_v17 }
  0x35   : > { %v245_v20 = vmul.f32 0.5, %v244_v18 }
  0x36   : > { %v234_v21 = vsub.f32 1.5, %v233_v19 }
  0x37   : > { %v246_v22 = vsub.f32 1.5, %v245_v20 }
  0x38   : > { %v235_v23 = vmul.f32 %v464_v13, %v234_v21 }
  0x39   : > { %v247_v24 = vmul.f32 %v466_v14, %v246_v22 }
  0x3a   : > { %v236_v25 = vmul.f32 %v235_v23, %v228_v11 }
  0x3b   : > { %v248_v26 = vmul.f32 %v247_v24, %v229_v12 }
  0x3c   : > { %v238_v28 = vsel %vm237_vm1, %v228_v11, %v236_v25 }
  0x3d   : > { %v250_v31 = vsel %vm249_vm2, %v229_v12, %v248_v26  ;;  %v241_v33 = vsel %vm239_vm3, %v240_v27, %v238_v28 }
  0x3e   : > { %v253_v34 = vsel %vm251_vm4, %v252_v29, %v250_v31  ;;  %v256_v37 = vmul.f32 0.47942555, %v241_v33 }
  0x3f   : > { %v257_v39 = vmul.f32 0.47942555, %v253_v34 }
  0x40   : > { %v258_v41 = vsub.f32 %v254_v36, %v256_v37 }
  0x41   : > { %v259_v43 = vsub.f32 %v255_v38, %v257_v39 }
  0x99   : > { %v211_v32 = vpop.permute.xlu0 %210 }
  0x9a   : > { %vm212_vm5 = vcmp.eq.s32.totalorder %v204_v35, %v211_v32  ;;  %vm213_vm7 = vcmp.eq.s32.totalorder %v205_v40, %v211_v32 }
  0xa1   : > { %v218_v42 = vpop.permute.xlu0 %217 }
  0xa2   : > { %vm219_vm6 = vcmp.eq.s32.totalorder %v218_v42, 1 }
  0xa3   : > { %vm220_vm8 = vmand %vm212_vm5, %vm219_vm6 }
  0xa4   : > { %vm221_vm9 = vmand %vm213_vm7, %vm219_vm6  ;;  %v260_v44 = vsel %vm220_vm8, %v258_v41, %v222_v5 }
  0xa5   : > { %v261_v45 = vsel %vm221_vm9, %v259_v43, %v223_v6  ;;  %v262_v46 = vmul.f32 -64.0, %v260_v44 }
  0xa6   : > { %v263_v47 = vmul.f32 -64.0, %v261_v45 }
  0xa7   : > { %264 = vst [vmem:[%s192_s30] sm:$0xff] %v262_v46 }
  0xa8   : > { %265 = vst [vmem:[%s192_s30 + $0x8] sm:$0xff] %v263_v47 }
  0xa9   : > { %524 = shalt.err (!%p521_p0)
}
  0xaa   : > { %401 = dma.vmem_to_hbm [thread:$0]  (%p648_p9), %s283_s3, 256, %s285_s4, %s267_s12  }
  0xab PF: > { %s296_s7 = sand.u32 1, %s559_s9   ;;  %p408_p1 = pnand %p384_p12, %p655_p11 }
  0xac   : > { %s297_s20 = scalar_lea.sflag [#allocation4], %s296_s7 }
  0xad   : > { %p409_p2 = pneg %p408_p1 }
  0xaf   : > { %554 = dma.done.wait (%p409_p2), %s297_s20, 256  }
  0xb0   : > { %556 = vsyncadd (%p409_p2), %s297_s20, 4294967040  ;;  %s18_s14 = sadd.s32 1, %s579_s14   ;;  %s733_s9 = smov %s563_s10 }
  0xb1   : > { %p15_p3 = scmp.ge.s32.totalorder %s18_s14, 4   ;;  %s734_s10 = smov %s567_s11 }
  0xb2   : > { %s735_s11 = smov %s653_s23  ;;  %s736_s12 = smov %s575_s13 }
  0xb3   : > { %s737_s13 = smov %s739_s17  ;;  %17 = sbr.rel (!%p15_p3) target bundleno = 6 (0x6), region = 76 }
  0xb8   :  { %303 = vsyncpa [#allocation3], 1 }
  0xb9   :  { %305 = vsyncpa [#allocation3 + $0x1], 1 }
  0xba   :  { %306 = vsyncpa [#allocation4], 1 }
  0xbb   :  { %308 = vsyncpa [#allocation4 + $0x1], 1 }

</bundles_post_ra>
